<compile_context>
chip_gen: v6e
topology: v6e:2x2x1
jax: 0.10.0
libtpu: 0.0.40
codegen_flags: <defaults>
</compile_context>

<pallas_src>
import jax
import jax.numpy as jnp
from jax.experimental import pallas as pl
from jax.experimental.pallas import tpu as pltpu

_MIB = 1024 * 1024


def _round_up(x, m):
    return ((x + m - 1) // m) * m


def _vmem_budget():
    """Return (vmem_limit_bytes, tile_budget_bytes, multi_core) — generation aware."""
    try:
        cap = int(pltpu.get_tpu_info().vmem_capacity_bytes)
    except Exception:  # query unavailable -> assume the smallest (v7x: 64 MiB / TC)
        cap = 64 * _MIB
    multi_core = cap <= 64 * _MIB          # v7x: 64 MiB per TC, 2 TCs/chip
    if cap >= 128 * _MIB:                  # v5e / v6e: plenty of room
        vmem_limit = 96 * _MIB
    else:                                  # v7x: leave headroom for compiler scratch
        vmem_limit = cap - 8 * _MIB
    tile_budget = vmem_limit - 4 * _MIB    # extra slack for semaphores / spills
    return vmem_limit, tile_budget, multi_core


def _pick_hid_chunk(hid_p):
    """Hidden-dim chunk for the in-kernel loop (multiple of 128, divides hid_p)."""
    if hid_p <= 512:
        return hid_p
    for c in (512, 384, 256, 128):
        if hid_p % c == 0:
            return c
    return 128


def prepare_projection_weights(w1, w2, compute_dtype=None):
    """One-time weight preparation (call at parameter-load time, NOT per step).

    w1: (hidden, in), w2: (out, hidden) in PyTorch nn.Linear layout.
    Returns transposed weights w1t: (in, hid_p), w2t: (hid_p, out_p) in the compute
    dtype. Hidden/out dims are zero-padded to multiples of 128 (exact: padded
    columns/rows contribute 0). The contraction dim of w1t stays at the true
    in_features, so activations need no wrapper-side padding.
    On v6e/v7x pass compute_dtype=jnp.bfloat16 for MXU-native throughput (f32 accum).
    """
    hidden_features, in_features = w1.shape
    out_features, _ = w2.shape
    dtype = compute_dtype if compute_dtype is not None else w1.dtype

    hid_p = _round_up(hidden_features, 128)
    out_p = _round_up(out_features, 128)

    w1t = jnp.zeros((in_features, hid_p), dtype).at[:, :hidden_features].set(
        w1.T.astype(dtype))
    w2t = jnp.zeros((hid_p, out_p), dtype).at[:hidden_features, :out_features].set(
        w2.T.astype(dtype))
    return w1t, w2t, (in_features, hidden_features, out_features)


def _plan_tiles(batch, in_f, hid_p, out_p, x_bpe, out_bpe, cdtype,
                tile_budget, multi_core):
    """Pick ('resident', tile_m, None) or ('hid_grid', tile_m, hid_tile)."""
    sub = 16 if min(x_bpe, out_bpe) < 4 else 8
    wbpe = jnp.dtype(cdtype).itemsize
    batch_r = _round_up(batch, sub)
    cap_rows = 512 if multi_core else 1024         # v7x vs v5e/v6e tile_m cap

    def act_bytes_per_row(hid_chunk):
        return (2 * in_f * x_bpe                   # double-buffered x tile
                + 2 * out_p * out_bpe              # double-buffered out tile
                + in_f * wbpe                      # in-kernel cast copy of x
                + hid_chunk * 4                    # f32 h chunk
                + 2 * out_p * 4)                   # f32 accumulator (+ slack)

    # ---- Plan A: weights fully resident, single-buffered via pl.Buffered(1) (1x).
    resident_w = (in_f * hid_p + hid_p * out_p) * wbpe
    hid_chunk = _pick_hid_chunk(hid_p)
    avail = tile_budget - resident_w
    if avail > 0:
        tile_m = (avail // act_bytes_per_row(hid_chunk)) // sub * sub
        tile_m = min(tile_m, cap_rows, batch_r)
        if tile_m >= min(256, batch_r):            # enough rows to keep the MXU fed
            if multi_core and batch_r >= 4 * 256:
                # >=4 programs => >=2 per TensorCore, so each core's x/out DMAs
                # still overlap with compute (software pipelining).
                tile_m = min(tile_m, _round_up(pl.cdiv(batch, 4), sub))
            return "resident", int(max(tile_m, sub)), None

    # ---- Plan B: hidden dim as trailing reduction grid axis (weights tiled,
    #      double-buffered; f32 accumulator scratch holds the partial output).
    tile_m = max(sub, min(256, cap_rows, batch_r))
    hid_tile = 128
    for cand in range(hid_p, 127, -128):
        if hid_p % cand:
            continue
        w_tiles = 2 * (in_f * cand + cand * out_p) * wbpe
        if w_tiles + tile_m * act_bytes_per_row(cand) <= tile_budget:
            hid_tile = cand
            break
    return "hid_grid", int(tile_m), int(hid_tile)


def _make_resident_kernel(cdtype, hid_chunk, n_chunks):
    def kernel(x_ref, w1t_ref, w2t_ref, o_ref):
        # x tile: (TM, in_f)  (original dtype -> cast in-kernel, no extra HBM pass)
        x = x_ref[...].astype(cdtype)
        acc = jnp.zeros((x_ref.shape[0], o_ref.shape[1]), jnp.float32)
        # Statically unrolled hidden-dim chunking: only a (TM, hid_chunk) f32
        # intermediate ever lives; the full (TM, hid_p) one never materializes.
        for c in range(n_chunks):
            lo = c * hid_chunk
            h = jnp.dot(x, w1t_ref[:, lo:lo + hid_chunk],
                        preferred_element_type=jnp.float32)
            h = jnp.maximum(h, 0.0)                        # ReLU
            acc = acc + jnp.dot(h.astype(cdtype),
                                w2t_ref[lo:lo + hid_chunk, :],
                                preferred_element_type=jnp.float32)
        o_ref[...] = acc.astype(o_ref.dtype)
    return kernel


def _make_hid_grid_kernel(cdtype):
    def kernel(x_ref, w1t_ref, w2t_ref, o_ref, acc_ref):
        k = pl.program_id(1)

        @pl.when(k == 0)
        def _init():
            acc_ref[...] = jnp.zeros_like(acc_ref)

        x = x_ref[...].astype(cdtype)
        h = jnp.maximum(
            jnp.dot(x, w1t_ref[...], preferred_element_type=jnp.float32), 0.0)
        acc_ref[...] += jnp.dot(h.astype(cdtype), w2t_ref[...],
                                preferred_element_type=jnp.float32)

        @pl.when(k == pl.num_programs(1) - 1)
        def _finalize():
            o_ref[...] = acc_ref[...].astype(o_ref.dtype)
    return kernel


def projection_head(x, w1t, w2t, orig_dims, *, tile_m=None, plan=None, hid_tile=None):
    """Fused Linear -> ReLU -> Linear. x: (B, in_features); weights prepared by
    prepare_projection_weights(). Returns (B, out_features) in x.dtype."""
    B, in_f = x.shape
    in_f_w, hid_p = w1t.shape
    hid_p2, out_p = w2t.shape
    assert in_f == in_f_w and hid_p == hid_p2
    _, _, out_features = orig_dims
    cdtype = w1t.dtype

    x_bpe = jnp.dtype(x.dtype).itemsize
    out_bpe = x_bpe
    vmem_limit, tile_budget, multi_core = _vmem_budget()
    auto_plan, auto_tile_m, auto_hid_tile = _plan_tiles(
        B, in_f, hid_p, out_p, x_bpe, out_bpe, cdtype, tile_budget, multi_core)
    if plan is None:
        plan = auto_plan
    if tile_m is None:
        tile_m = auto_tile_m
    if hid_tile is None:
        hid_tile = auto_hid_tile if auto_hid_tile is not None else 128
    assert hid_p % hid_tile == 0

    wbpe = jnp.dtype(cdtype).itemsize
    cost = pl.CostEstimate(
        flops=2 * B * (in_f * hid_p + hid_p * out_p),
        transcendentals=0,
        bytes_accessed=(B * in_f * x_bpe
                        + (in_f * hid_p + hid_p * out_p) * wbpe
                        + B * out_p * out_bpe),
    )
    compiler_params = pltpu.CompilerParams(
        dimension_semantics=("parallel",) if plan == "resident"
        else ("parallel", "arbitrary"),
        vmem_limit_bytes=int(vmem_limit),
    )

    if plan == "resident":
        hid_chunk = _pick_hid_chunk(hid_p)
        n_chunks = hid_p // hid_chunk
        kernel = _make_resident_kernel(cdtype, hid_chunk, n_chunks)
        out_padded = pl.pallas_call(
            kernel,
            out_shape=jax.ShapeDtypeStruct((B, out_p), x.dtype),
            grid_spec=pltpu.PrefetchScalarGridSpec(
                num_scalar_prefetch=0,
                grid=(pl.cdiv(B, tile_m),),
                in_specs=[
                    pl.BlockSpec((tile_m, in_f), lambda i: (i, 0)),
                    # Constant-index resident weights: single buffer, single DMA.
                    pl.BlockSpec((in_f, hid_p), lambda i: (0, 0),
                                 pipeline_mode=pl.Buffered(1)),
                    pl.BlockSpec((hid_p, out_p), lambda i: (0, 0),
                                 pipeline_mode=pl.Buffered(1)),
                ],
                out_specs=pl.BlockSpec((tile_m, out_p), lambda i: (i, 0)),
            ),
            compiler_params=compiler_params,
            cost_estimate=cost,
        )(x, w1t, w2t)
    else:  # "hid_grid": hidden dim tiled as the trailing reduction grid axis.
        kernel = _make_hid_grid_kernel(cdtype)
        out_padded = pl.pallas_call(
            kernel,
            out_shape=jax.ShapeDtypeStruct((B, out_p), x.dtype),
            grid_spec=pltpu.PrefetchScalarGridSpec(
                num_scalar_prefetch=0,
                grid=(pl.cdiv(B, tile_m), hid_p // hid_tile),
                in_specs=[
                    pl.BlockSpec((tile_m, in_f), lambda i, k: (i, 0)),
                    pl.BlockSpec((in_f, hid_tile), lambda i, k: (0, k)),
                    pl.BlockSpec((hid_tile, out_p), lambda i, k: (k, 0)),
                ],
                out_specs=pl.BlockSpec((tile_m, out_p), lambda i, k: (i, 0)),
                scratch_shapes=[pltpu.VMEM((tile_m, out_p), jnp.float32)],
            ),
            compiler_params=compiler_params,
            cost_estimate=cost,
        )(x, w1t, w2t)

    # Padding columns are exact zeros; slice back to the true output width.
    return out_padded[:, :out_features]


def projection_head_ref(x, w1, w2):
    h = jnp.maximum(x @ w1.T, 0.0)
    return h @ w2.T


if __name__ == "__main__":
    key = jax.random.PRNGKey(0)

    # ---- Config 1: small shapes consistent with the module's forward. ----
    in_features, hidden_features, out_features = 32, 64, 16
    batch = 64
    kx, k1, k2, k3, k4, k5 = jax.random.split(key, 6)

    x = jax.random.normal(kx, (batch, in_features), dtype=jnp.float32)
    w1 = jax.random.normal(k1, (hidden_features, in_features), jnp.float32) * (
        1.0 / jnp.sqrt(in_features))
    w2 = jax.random.normal(k2, (out_features, hidden_features), jnp.float32) * (
        1.0 / jnp.sqrt(hidden_features))
    ref = projection_head_ref(x, w1, w2)

    # f32, resident-weight path (tight check).
    w1t, w2t, dims = prepare_projection_weights(w1, w2)
    out = jax.block_until_ready(projection_head(x, w1t, w2t, dims))
    assert out.shape == (batch, out_features)
    assert jnp.allclose(out, ref, atol=1e-4, rtol=1e-4), "f32 resident mismatch"

    # bf16 compute path (MXU-native; f32 accumulation; looser check).
    w1t_bf, w2t_bf, dims_bf = prepare_projection_weights(
        w1, w2, compute_dtype=jnp.bfloat16)
    out_bf = jax.block_until_ready(projection_head(x, w1t_bf, w2t_bf, dims_bf))
    assert out_bf.shape == (batch, out_features)
    assert jnp.allclose(out_bf, ref, atol=5e-2, rtol=5e-2), "bf16 mismatch"

    # ---- Config 2: force the hidden-grid fallback (multi-step reduction axis). ----
    in2, hid2, out2, b2 = 16, 320, 24, 40   # hid_p=384 -> 3 reduction steps at 128
    x2 = jax.random.normal(k3, (b2, in2), dtype=jnp.float32)
    w1b = jax.random.normal(k4, (hid2, in2), jnp.float32) * (1.0 / jnp.sqrt(in2))
    w2b = jax.random.normal(k5, (out2, hid2), jnp.float32) * (1.0 / jnp.sqrt(hid2))
    ref2 = projection_head_ref(x2, w1b, w2b)

    w1t2, w2t2, dims2 = prepare_projection_weights(w1b, w2b)
    out2v = jax.block_until_ready(
        projection_head(x2, w1t2, w2t2, dims2, plan="hid_grid", hid_tile=128))
    assert out2v.shape == (b2, out2)
    assert jnp.allclose(out2v, ref2, atol=1e-4, rtol=1e-4), "hid_grid mismatch"

    print("KERNEL_OK")
</pallas_src>

<mosaic_0001>
module attributes {stable_mosaic.version = 11 : i64} {
  func.func @kernel(%arg0: i32, %arg1: memref<64x32xf32, #tpu.memory_space<vmem>>, %arg2: memref<32x128xf32, #tpu.memory_space<vmem>>, %arg3: memref<128x128xf32, #tpu.memory_space<vmem>>, %arg4: memref<64x128xf32, #tpu.memory_space<vmem>>) attributes {dimension_semantics = [#tpu.dimension_semantics<parallel>], iteration_bounds = array<i64: 1>, scalar_prefetch = 0 : i64, scratch_operands = 0 : i64, tpu.core_type = #tpu.core_type<tc>, window_params = [{transform_indices = @transform_0, window_bounds = array<i64: 64, 32>}, {pipeline_mode = #tpu.pipeline_mode<synchronous>, transform_indices = @transform_1, window_bounds = array<i64: 32, 128>}, {pipeline_mode = #tpu.pipeline_mode<synchronous>, transform_indices = @transform_2, window_bounds = array<i64: 128, 128>}, {transform_indices = @transform_3, window_bounds = array<i64: 64, 128>}]} {
    %c0 = arith.constant 0 : index
    %c0_0 = arith.constant 0 : index
    %0 = vector.load %arg1[%c0, %c0_0] : memref<64x32xf32, #tpu.memory_space<vmem>>, vector<64x32xf32>
    %cst = arith.constant 0.000000e+00 : f32
    %1 = vector.broadcast %cst : f32 to vector<64x128xf32>
    %c0_1 = arith.constant 0 : index
    %c0_2 = arith.constant 0 : index
    %2 = vector.load %arg2[%c0_1, %c0_2] : memref<32x128xf32, #tpu.memory_space<vmem>>, vector<32x128xf32>
    %cst_3 = arith.constant dense<0.000000e+00> : vector<64x128xf32>
    %3 = tpu.matmul %0, %2, %cst_3 {dimension_numbers = #tpu.dot_dimension_numbers<[1], [0], [0], [1], [0, 0, 1, 1], [], []>} : vector<64x32xf32>, vector<32x128xf32>, vector<64x128xf32> -> vector<64x128xf32>
    %cst_4 = arith.constant 0.000000e+00 : f32
    %4 = vector.broadcast %cst_4 : f32 to vector<64x128xf32>
    %5 = arith.maximumf %3, %4 : vector<64x128xf32>
    %c0_5 = arith.constant 0 : index
    %c0_6 = arith.constant 0 : index
    %6 = vector.load %arg3[%c0_5, %c0_6] : memref<128x128xf32, #tpu.memory_space<vmem>>, vector<128x128xf32>
    %cst_7 = arith.constant dense<0.000000e+00> : vector<64x128xf32>
    %7 = tpu.matmul %5, %6, %cst_7 {dimension_numbers = #tpu.dot_dimension_numbers<[1], [0], [0], [1], [0, 0, 1, 1], [], []>} : vector<64x128xf32>, vector<128x128xf32>, vector<64x128xf32> -> vector<64x128xf32>
    %8 = arith.addf %1, %7 : vector<64x128xf32>
    %c0_8 = arith.constant 0 : index
    %c0_9 = arith.constant 0 : index
    %9 = vector.load %arg4[%c0_8, %c0_9] : memref<64x128xf32, #tpu.memory_space<vmem>>, vector<64x128xf32>
    tpu.vector_store %arg4[%c0_8, %c0_9], %8 {strides = array<i32>} : memref<64x128xf32, #tpu.memory_space<vmem>>, vector<64x128xf32>,
    return
  }
  func.func @transform_0(%arg0: i32) -> (i32, i32) {
    %c0_i32 = arith.constant 0 : i32
    %c0_i32_0 = arith.constant 0 : i32
    return %arg0, %c0_i32 : i32, i32
  }
  func.func @transform_1(%arg0: i32) -> (i32, i32) {
    %c0_i32 = arith.constant 0 : i32
    %c0_i32_0 = arith.constant 0 : i32
    %c0_i32_1 = arith.constant 0 : i32
    return %c0_i32, %c0_i32_0 : i32, i32
  }
  func.func @transform_2(%arg0: i32) -> (i32, i32) {
    %c0_i32 = arith.constant 0 : i32
    %c0_i32_0 = arith.constant 0 : i32
    %c0_i32_1 = arith.constant 0 : i32
    return %c0_i32, %c0_i32_0 : i32, i32
  }
  func.func @transform_3(%arg0: i32) -> (i32, i32) {
    %c0_i32 = arith.constant 0 : i32
    %c0_i32_0 = arith.constant 0 : i32
    return %arg0, %c0_i32 : i32, i32
  }
}

</mosaic_0001>

<bundles_post_ra>
// kernel: tpu_custom_call.1
= control target key start
LH: loop header
LB: loop body
LE: loop exit
PB: predicated region body
PF: predicated region fallthrough
CT: control target
= control target key end

     0   :  { %8 = vsyncpa [#allocation3], 0  ;;  %s593_s0 = inlined_call_operand.vmem [shape: f32[64,32], index: 0, kind: input, shape index: {}]   ;;  %s594_s1 = inlined_call_operand.vmem [shape: f32[32,128], index: 1, kind: input, shape index: {}]   ;;  %s595_s2 = inlined_call_operand.hbm [shape: f32[128,128], index: 2, kind: input, shape index: {}]   ;;  %s596_s3 = inlined_call_operand.hbm [shape: f32[64,128], index: 3, kind: output, shape index: {}]  }
   0x1   :  { %9 = vsyncpa [#allocation4], 0  ;;  %s513_s12 = smov [#allocation2]  }
   0x2   :  { %s19_s13 = sshll.u32 %s513_s12, 4  ;;  %s20_s13 = int_to_ptr.vmem [resolvable:$true] %s19_s13 }
   0x3   :  { %s477_s14 = scalar_lea.vmem %s20_s13, 2048  ;;  %p482_p1 = scmp.lt.s32.totalorder %s20_s13, %s20_s13 }
   0x4   :  { %p478_p0 = scmp.ne.s32.totalorder %s20_s13, %s477_s14  ;;  %p483_p2 = scmp.lt.s32.totalorder %s477_s14, %s477_s14 }
   0x6   :  { %p484_p3 = por %p483_p2, %p482_p1 }
   0x8   :  { %p485_p4 = pnand %p484_p3, %p478_p0 }
   0xa   :  { %488 = shalt.err (!%p485_p4)
}
   0xb   :  { %s514_s15 = smov 128   ;;  %s515_s16 = smov 8  }
   0xc   :  { %25 = dma.hbm_to_vmem [thread:$0]  %s595_s2, 2048, %s20_s13, [#allocation3], %s514_s15, %s514_s15, %s515_s16  }
   0xd   :  { %509 = dma.done.wait [#allocation3], 2048  }
   0xe   :  { %510 = vsyncadd [#allocation3], 4294965248  ;;  %vm41_vm0 = vcmask 261120   ;;  %v40_v0 = vld [vmem:[%s594_s1 + $0x18] sm:$0xff]  ;;  %v39_v1 = vld [vmem:[%s594_s1 + $0x10] sm:$0xff] }
   0xf   :  { %369 = vmatprep.subr.mxu0 %v40_v0  ;;  %v29_v2 = vld [vmem:[%s593_s0] sm:$0xff]  ;;  %v38_v3 = vld [vmem:[%s594_s1 + $0x8] sm:$0xff]  ;;  %v194_v5 = vld [vmem:[#allocation2 + $0x78] sm:$0xff] }
  0x10   :  { %370 = vmatpush3.msra.mxu0 %v40_v0  ;;  %377 = vmatprep.mubr.msk.f32.mxu0 %vm41_vm0, %v29_v2  ;;  %v37_v4 = vld [vmem:[%s594_s1] sm:$0xff]  ;;  %v30_v6 = vld [vmem:[%s593_s0 + $0x8] sm:$0xff]  ;;  %v193_v7 = vld [vmem:[#allocation2 + $0x70] sm:$0xff] }
  0x11   :  { %371 = vmatprep.subr.mxu0 %v39_v1  ;;  %433 = vmatprep.subr.mxu1 %v194_v5  ;;  %v31_v8 = vld [vmem:[%s593_s0 + $0x10] sm:$0xff]  ;;  %v32_v9 = vld [vmem:[%s593_s0 + $0x18] sm:$0xff]  ;;  %v192_v10 = vld [vmem:[#allocation2 + $0x68] sm:$0xff] }
  0x12   :  { %372 = vmatpush3.msra.mxu0 %v39_v1  ;;  %449 = vmatpush3.msra.mxu1 %v194_v5  ;;  %v33_v11 = vld [vmem:[%s593_s0 + $0x20] sm:$0xff]  ;;  %v34_v13 = vld [vmem:[%s593_s0 + $0x28] sm:$0xff]  ;;  %v190_v14 = vld [vmem:[#allocation2 + $0x58] sm:$0xff] }
  0x13   :  { %373 = vmatprep.subr.mxu0 %v38_v3  ;;  %434 = vmatprep.subr.mxu1 %v193_v7  ;;  %v191_v12 = vld [vmem:[#allocation2 + $0x60] sm:$0xff]  ;;  %v35_v15 = vld [vmem:[%s593_s0 + $0x30] sm:$0xff]  ;;  %v36_v17 = vld [vmem:[%s593_s0 + $0x38] sm:$0xff]  ;;  %s516_s0 = smov [#allocation5]  }
  0x14   :  { %374 = vmatpush3.msra.mxu0 %v38_v3  ;;  %450 = vmatpush3.msra.mxu1 %v193_v7  ;;  %v189_v16 = vld [vmem:[#allocation2 + $0x50] sm:$0xff]  ;;  %v188_v18 = vld [vmem:[#allocation2 + $0x48] sm:$0xff]  ;;  %v187_v19 = vld [vmem:[#allocation2 + $0x40] sm:$0xff]  ;;  %s313_s14 = sshll.u32 %s516_s0, 4  ;;  %s314_s14 = int_to_ptr.vmem [resolvable:$true] %s313_s14 }
  0x15   :  { %375 = vmatprep.subr.mxu0 %v37_v4  ;;  %435 = vmatprep.subr.mxu1 %v192_v10  ;;  %v186_v20 = vld [vmem:[#allocation2 + $0x38] sm:$0xff]  ;;  %v185_v21 = vld [vmem:[#allocation2 + $0x30] sm:$0xff]  ;;  %v184_v22 = vld [vmem:[#allocation2 + $0x28] sm:$0xff]  ;;  %s489_s17 = scalar_lea.vmem %s314_s14, 1024  ;;  %p494_p6 = scmp.lt.s32.totalorder %s314_s14, %s314_s14 }
  0x16   :  { %376 = vmatpush3.msra.mxu0 %v37_v4  ;;  %451 = vmatpush3.msra.mxu1 %v192_v10  ;;  %v183_v23 = vld [vmem:[#allocation2 + $0x20] sm:$0xff]  ;;  %v182_v24 = vld [vmem:[#allocation2 + $0x18] sm:$0xff]  ;;  %v181_v25 = vld [vmem:[#allocation2 + $0x10] sm:$0xff]  ;;  %p490_p5 = scmp.ne.s32.totalorder %s314_s14, %s489_s17  ;;  %p495_p7 = scmp.lt.s32.totalorder %s489_s17, %s489_s17 }
  0x17   :  { %378 = vmatmul.mubr.msk.f32.vlgmr.msra.gmra.mxu0 %vm41_vm0, %v30_v6  ;;  %389 = vmatprep.subr.mxu0 %v194_v5  ;;  %v180_v26 = vld [vmem:[#allocation2 + $0x8] sm:$0xff]  ;;  %v179_v27 = vld [vmem:[#allocation2] sm:$0xff] }
  0x18   :  { %380 = vmatprep.mubr.msk.f32.mxu0 %vm41_vm0, %v31_v8  ;;  %390 = vmatpush3.msra.mxu0 %v194_v5  ;;  %p496_p8 = por %p495_p7, %p494_p6 }
  0x19   :  { %391 = vmatprep.subr.mxu0 %v193_v7  ;;  %436 = vmatprep.subr.mxu1 %v191_v12 }
  0x1a   :  { %392 = vmatpush3.msra.mxu0 %v193_v7  ;;  %452 = vmatpush3.msra.mxu1 %v191_v12  ;;  %p497_p9 = pnand %p496_p8, %p490_p5 }
  0x1b   :  { %381 = vmatmul.mubr.msk.f32.gmra.mxu0 %vm41_vm0, %v32_v9  ;;  %393 = vmatprep.subr.mxu0 %v192_v10 }
  0x1c   :  { %383 = vmatprep.mubr.msk.f32.mxu0 %vm41_vm0, %v33_v11  ;;  %394 = vmatpush3.msra.mxu0 %v192_v10 }
  0x1d   :  { %395 = vmatprep.subr.mxu0 %v191_v12  ;;  %437 = vmatprep.subr.mxu1 %v190_v14 }
  0x1e   :  { %396 = vmatpush3.msra.mxu0 %v191_v12  ;;  %453 = vmatpush3.msra.mxu1 %v190_v14 }
  0x1f   :  { %384 = vmatmul.mubr.msk.f32.gmra.mxu0 %vm41_vm0, %v34_v13  ;;  %397 = vmatprep.subr.mxu0 %v190_v14 }
  0x20   :  { %386 = vmatprep.mubr.msk.f32.mxu0 %vm41_vm0, %v35_v15  ;;  %398 = vmatpush3.msra.mxu0 %v190_v14 }
  0x21   :  { %399 = vmatprep.subr.mxu0 %v189_v16  ;;  %438 = vmatprep.subr.mxu1 %v189_v16 }
  0x22   :  { %400 = vmatpush3.msra.mxu0 %v189_v16  ;;  %454 = vmatpush3.msra.mxu1 %v189_v16 }
  0x23   :  { %387 = vmatmul.mubr.msk.f32.gmra.mxu0 %vm41_vm0, %v36_v17  ;;  %401 = vmatprep.subr.mxu0 %v188_v18 }
  0x24   :  { %402 = vmatpush3.msra.mxu0 %v188_v18  ;;  %439 = vmatprep.subr.mxu1 %v188_v18 }
  0x25   :  { %403 = vmatprep.subr.mxu0 %v187_v19  ;;  %455 = vmatpush3.msra.mxu1 %v188_v18 }
  0x26   :  { %404 = vmatpush3.msra.mxu0 %v187_v19  ;;  %440 = vmatprep.subr.mxu1 %v187_v19 }
  0x27   :  { %405 = vmatprep.subr.mxu0 %v186_v20  ;;  %456 = vmatpush3.msra.mxu1 %v187_v19 }
  0x28   :  { %406 = vmatpush3.msra.mxu0 %v186_v20  ;;  %441 = vmatprep.subr.mxu1 %v186_v20 }
  0x29   :  { %407 = vmatprep.subr.mxu0 %v185_v21  ;;  %457 = vmatpush3.msra.mxu1 %v186_v20 }
  0x2a   :  { %408 = vmatpush3.msra.mxu0 %v185_v21  ;;  %442 = vmatprep.subr.mxu1 %v185_v21 }
  0x2b   :  { %409 = vmatprep.subr.mxu0 %v184_v22  ;;  %458 = vmatpush3.msra.mxu1 %v185_v21 }
  0x2c   :  { %410 = vmatpush3.msra.mxu0 %v184_v22  ;;  %443 = vmatprep.subr.mxu1 %v184_v22 }
  0x2d   :  { %411 = vmatprep.subr.mxu0 %v183_v23  ;;  %459 = vmatpush3.msra.mxu1 %v184_v22 }
  0x2e   :  { %412 = vmatpush3.msra.mxu0 %v183_v23  ;;  %444 = vmatprep.subr.mxu1 %v183_v23 }
  0x2f   :  { %413 = vmatprep.subr.mxu0 %v182_v24  ;;  %460 = vmatpush3.msra.mxu1 %v183_v23 }
  0x30   :  { %414 = vmatpush3.msra.mxu0 %v182_v24  ;;  %445 = vmatprep.subr.mxu1 %v182_v24 }
  0x31   :  { %461 = vmatpush3.msra.mxu1 %v182_v24  ;;  %415 = vmatprep.subr.mxu0 %v181_v25 }
  0x32   :  { %446 = vmatprep.subr.mxu1 %v181_v25  ;;  %416 = vmatpush3.msra.mxu0 %v181_v25 }
  0x33   :  { %462 = vmatpush3.msra.mxu1 %v181_v25  ;;  %417 = vmatprep.subr.mxu0 %v180_v26 }
  0x34   :  { %447 = vmatprep.subr.mxu1 %v180_v26  ;;  %418 = vmatpush3.msra.mxu0 %v180_v26 }
  0x35   :  { %463 = vmatpush3.msra.mxu1 %v180_v26  ;;  %419 = vmatprep.subr.mxu0 %v179_v27 }
  0x36   :  { %448 = vmatprep.subr.mxu1 %v179_v27  ;;  %420 = vmatpush3.msra.mxu0 %v179_v27 }
  0x37   :  { %464 = vmatpush3.msra.mxu1 %v179_v27 }
  0xd7   :  { %v379_v28 = vpop.f32.mrf.mxu0 }
  0xd8   :  { %v172_v31 = vmax.f32 %v379_v28, 0.0 }
  0xd9   :  { %v132_v29 = vpop.f32.mrf.mxu0 }
  0xda   :  { %v171_v30 = vmax.f32 %v132_v29, 0.0 }
  0xdb   :  { %v382_v32 = vpop.f32.mrf.mxu0 }
  0xdc   :  { %421 = vmatprep.mubr.f32.mxu0 %v171_v30  ;;  %v174_v35 = vmax.f32 %v382_v32, 0.0 }
  0xdd   :  { %v142_v33 = vpop.f32.mrf.mxu0  ;;  %422 = vmatmul.mubr.f32.vlgmr.msra.gmra.mxu0 %v172_v31 }
  0xde   :  { %v173_v34 = vmax.f32 %v142_v33, 0.0 }
  0xdf   :  { %v385_v36 = vpop.f32.mrf.mxu0 }
  0xe0   :  { %424 = vmatprep.mubr.f32.mxu1 %v173_v34  ;;  %v176_v39 = vmax.f32 %v385_v36, 0.0 }
  0xe1   :  { %v152_v37 = vpop.f32.mrf.mxu0  ;;  %425 = vmatmul.mubr.f32.vlgmr.msra.gmra.mxu1 %v174_v35 }
  0xe2   :  { %v175_v38 = vmax.f32 %v152_v37, 0.0 }
  0xe3   :  { %v388_v40 = vpop.f32.mrf.mxu0 }
  0xe4   :  { %427 = vmatprep.mubr.f32.mxu1 %v175_v38  ;;  %v178_v43 = vmax.f32 %v388_v40, 0.0 }
  0xe5   :  { %v162_v41 = vpop.f32.mrf.mxu0  ;;  %428 = vmatmul.mubr.f32.gmra.mxu1 %v176_v39 }
  0xe6   :  { %v177_v42 = vmax.f32 %v162_v41, 0.0 }
  0xe8   :  { %430 = vmatprep.mubr.f32.mxu1 %v177_v42 }
  0xe9   :  { %431 = vmatmul.mubr.f32.gmra.mxu1 %v178_v43 }
 0x19d   :  { %v423_v44 = vpop.f32.mrf.mxu0 }
 0x19e   :  { %301 = vst [vmem:[#allocation5 + $0x8] sm:$0xff] %v423_v44 }
 0x19f   :  { %v261_v45 = vpop.f32.mrf.mxu0 }
 0x1a0   :  { %300 = vst [vmem:[#allocation5] sm:$0xff] %v261_v45 }
 0x1a1   :  { %v426_v46 = vpop.f32.mrf.mxu1 }
 0x1a2   :  { %303 = vst [vmem:[#allocation5 + $0x18] sm:$0xff] %v426_v46 }
 0x1a3   :  { %v271_v47 = vpop.f32.mrf.mxu1 }
 0x1a4   :  { %302 = vst [vmem:[#allocation5 + $0x10] sm:$0xff] %v271_v47 }
 0x1a5   :  { %v429_v48 = vpop.f32.mrf.mxu1 }
 0x1a6   :  { %305 = vst [vmem:[#allocation5 + $0x28] sm:$0xff] %v429_v48 }
 0x1a7   :  { %v281_v49 = vpop.f32.mrf.mxu1 }
 0x1a8   :  { %304 = vst [vmem:[#allocation5 + $0x20] sm:$0xff] %v281_v49 }
 0x1a9   :  { %v432_v50 = vpop.f32.mrf.mxu1 }
 0x1aa   :  { %307 = vst [vmem:[#allocation5 + $0x38] sm:$0xff] %v432_v50 }
 0x1ab   :  { %v291_v51 = vpop.f32.mrf.mxu1 }
 0x1ac   :  { %306 = vst [vmem:[#allocation5 + $0x30] sm:$0xff] %v291_v51 }
 0x1ad   :  { %500 = shalt.err (!%p497_p9)
}
 0x1ae   :  { %319 = dma.vmem_to_hbm [thread:$0]  %s314_s14, 1024, %s596_s3, [#allocation4], %s514_s15, %s514_s15, %s515_s16  }
 0x1af   :  { %511 = dma.done.wait [#allocation4], 1024  }
 0x1b0   :  { %512 = vsyncadd [#allocation4], 4294966272 }
 0x1b1   :  { %323 = vsyncpa [#allocation3], 1 }
 0x1b2   :  { %324 = vsyncpa [#allocation4], 1 }

</bundles_post_ra>
